<compile_context>
chip_gen: v7x
topology: tpu7x:2x2x1
jax: 0.10.0
libtpu: 0.0.40
codegen_flags: <defaults>
</compile_context>

<pallas_src>
import jax
import jax.numpy as jnp
from jax.experimental import pallas as pl
from jax.experimental.pallas import tpu as pltpu

_LANE = 128


def _mlp_kernel(x_ref, w1_ref, b1_ref, w2_ref, b2_ref, o_ref):
    # Two MXU matmuls (bf16 in, f32 accumulate) + bias/ReLU on the VPU,
    # fully fused in VMEM for one (TN, F) row-tile of x.
    x = x_ref[...]                                                 # (TN, F) bf16
    h = jnp.dot(x, w1_ref[...], preferred_element_type=jnp.float32)
    h = jnp.maximum(h + b1_ref[...], 0.0)                          # f32, lane-dense (TN, 128)
    y = jnp.dot(h.astype(jnp.bfloat16), w2_ref[...],
                preferred_element_type=jnp.float32)
    o_ref[...] = (y + b2_ref[...]).astype(o_ref.dtype)             # lane-dense store


def _round_up(v, m):
    return ((v + m - 1) // m) * m


def cgmm_graph_predictor_forward(g_outs, w1, b1, w2, b2, *, tile_n=512):
    """g_outs: arbitrary-rank float array whose squeeze().reshape(N, -1) gives the
    per-graph feature matrix (exactly as the PyTorch module does).
    w1: (dim_features, hidden), b1: (hidden,)/(1,hidden),
    w2: (hidden, dim_target),  b2: (dim_target,)/(1,dim_target)."""
    n = g_outs.shape[0]
    # Glue (squeeze / reshape / .float()) stays in plain JAX.
    x = jnp.reshape(jnp.squeeze(g_outs).astype(jnp.float32), (n, -1))
    dim_features = x.shape[1]
    hidden = w1.shape[1]
    dim_target = w2.shape[1]

    # ---- lane-dense padding of the narrow dims (hidden, dim_target) ----------
    h_pad = _round_up(max(hidden, _LANE), _LANE)
    t_pad = _round_up(max(dim_target, _LANE), _LANE)

    w1p = jnp.zeros((dim_features, h_pad), jnp.bfloat16)
    w1p = w1p.at[:, :hidden].set(w1.astype(jnp.bfloat16))
    b1p = jnp.zeros((1, h_pad), jnp.float32)
    b1p = b1p.at[:, :hidden].set(jnp.reshape(b1, (1, -1)).astype(jnp.float32))
    w2p = jnp.zeros((h_pad, t_pad), jnp.bfloat16)
    w2p = w2p.at[:hidden, :dim_target].set(w2.astype(jnp.bfloat16))
    b2p = jnp.zeros((1, t_pad), jnp.float32)
    b2p = b2p.at[:, :dim_target].set(jnp.reshape(b2, (1, -1)).astype(jnp.float32))

    # ---- row tiling over N ----------------------------------------------------
    # TN is a multiple of 8; capped so double-buffered x + out tiles fit well
    # inside v7x's 64 MiB VMEM even for large dim_features.
    vmem_budget = 48 * 1024 * 1024  # leave headroom under the 64 MiB limit below
    per_row_bytes = 2 * (dim_features * 2 + t_pad * 4)  # 2x-buffered x(bf16)+out(f32)
    tn_cap = max(8, (vmem_budget // max(per_row_bytes, 1)) // 8 * 8)
    tn = min(tile_n, tn_cap, max(8, _round_up(n, 8)))
    n_pad = pl.cdiv(n, tn) * tn

    x_bf = x.astype(jnp.bfloat16)                 # halve HBM traffic on the big operand
    if n_pad != n:
        x_bf = jnp.pad(x_bf, ((0, n_pad - n), (0, 0)))

    grid = (n_pad // tn,)
    flops = 2 * n_pad * (dim_features * h_pad + h_pad * t_pad)
    bytes_accessed = (x_bf.size * 2 + w1p.size * 2 + w2p.size * 2
                      + b1p.size * 4 + b2p.size * 4 + n_pad * t_pad * 4)

    out = pl.pallas_call(
        _mlp_kernel,
        out_shape=jax.ShapeDtypeStruct((n_pad, t_pad), jnp.float32),
        grid=grid,
        in_specs=[
            pl.BlockSpec((tn, dim_features), lambda i: (i, 0)),   # streamed row tile
            pl.BlockSpec((dim_features, h_pad), lambda i: (0, 0)),  # resident weights
            pl.BlockSpec((1, h_pad), lambda i: (0, 0)),
            pl.BlockSpec((h_pad, t_pad), lambda i: (0, 0)),
            pl.BlockSpec((1, t_pad), lambda i: (0, 0)),
        ],
        out_specs=pl.BlockSpec((tn, t_pad), lambda i: (i, 0)),
        compiler_params=pltpu.CompilerParams(
            dimension_semantics=("parallel",),
            vmem_limit_bytes=64 * 1024 * 1024,
        ),
        cost_estimate=pl.CostEstimate(
            flops=flops, transcendentals=0, bytes_accessed=bytes_accessed),
    )(x_bf, w1p, b1p, w2p, b2p)

    # Undo the padding (rows past N and lanes past dim_target are scratch).
    return out[:n, :dim_target]


def init_linear_params(key, in_features, out_features):
    """Deterministic init matching torch.nn.Linear (uniform +-1/sqrt(fan_in)).
    Weight is returned already transposed to (in_features, out_features)."""
    kw, kb = jax.random.split(key)
    bound = 1.0 / jnp.sqrt(float(in_features))
    w = jax.random.uniform(kw, (in_features, out_features), jnp.float32,
                           minval=-bound, maxval=bound)
    b = jax.random.uniform(kb, (1, out_features), jnp.float32,
                           minval=-bound, maxval=bound)
    return w, b


if __name__ == "__main__":
    key = jax.random.PRNGKey(0)
    k_in, k1, k2 = jax.random.split(key, 3)

    # Small shapes consistent with the module:
    #   g_outs: (N, 1, C, L) -> squeeze -> (N, C, L) -> reshape -> (N, C*L)
    N, C, L = 8, 4, 8
    dim_features = C * L            # 32  (== dim_features[1] in the module)
    hidden_units = 32
    dim_target = 4

    g_outs = jax.random.normal(k_in, (N, 1, C, L), jnp.float32)
    w1, b1 = init_linear_params(k1, dim_features, hidden_units)
    w2, b2 = init_linear_params(k2, hidden_units, dim_target)

    y = cgmm_graph_predictor_forward(g_outs, w1, b1, w2, b2)
    jax.block_until_ready(y)
    assert y.shape == (N, dim_target)

    # Reference with the same bf16-matmul / f32-accumulate recipe (tight check).
    x = g_outs.squeeze().reshape(N, -1).astype(jnp.float32)
    xb = x.astype(jnp.bfloat16)
    h_ref = jnp.maximum(
        jnp.dot(xb, w1.astype(jnp.bfloat16), preferred_element_type=jnp.float32) + b1, 0.0)
    ref_bf16 = jnp.dot(h_ref.astype(jnp.bfloat16), w2.astype(jnp.bfloat16),
                       preferred_element_type=jnp.float32) + b2
    assert jnp.allclose(y, ref_bf16, atol=1e-4, rtol=1e-4)

    # Sanity vs. full-f32 PyTorch-equivalent math (loose: bf16 MXU inputs).
    ref_f32 = jnp.maximum(x @ w1 + b1, 0.0) @ w2 + b2
    assert jnp.allclose(y, ref_f32, atol=5e-2, rtol=5e-2)

    print("KERNEL_OK")
</pallas_src>

<mosaic_0001>
module attributes {stable_mosaic.version = 11 : i64} {
  func.func @_mlp_kernel(%arg0: i32, %arg1: memref<8x32xbf16, #tpu.memory_space<vmem>>, %arg2: memref<32x128xbf16, #tpu.memory_space<vmem>>, %arg3: memref<1x128xf32, #tpu.memory_space<vmem>>, %arg4: memref<128x128xbf16, #tpu.memory_space<vmem>>, %arg5: memref<1x128xf32, #tpu.memory_space<vmem>>, %arg6: memref<8x128xf32, #tpu.memory_space<vmem>>) attributes {dimension_semantics = [#tpu.dimension_semantics<parallel>], iteration_bounds = array<i64: 1>, scalar_prefetch = 0 : i64, scratch_operands = 0 : i64, tpu.core_type = #tpu.core_type<tc>, window_params = [{transform_indices = @transform_0, window_bounds = array<i64: 8, 32>}, {pipeline_mode = #tpu.pipeline_mode<synchronous>, transform_indices = @transform_1, window_bounds = array<i64: 32, 128>}, {pipeline_mode = #tpu.pipeline_mode<synchronous>, transform_indices = @transform_2, window_bounds = array<i64: 1, 128>}, {pipeline_mode = #tpu.pipeline_mode<synchronous>, transform_indices = @transform_3, window_bounds = array<i64: 128, 128>}, {pipeline_mode = #tpu.pipeline_mode<synchronous>, transform_indices = @transform_4, window_bounds = array<i64: 1, 128>}, {transform_indices = @transform_5, window_bounds = array<i64: 8, 128>}]} {
    %c0 = arith.constant 0 : index
    %c0_0 = arith.constant 0 : index
    %0 = vector.load %arg1[%c0, %c0_0] : memref<8x32xbf16, #tpu.memory_space<vmem>>, vector<8x32xbf16>
    %c0_1 = arith.constant 0 : index
    %c0_2 = arith.constant 0 : index
    %1 = vector.load %arg2[%c0_1, %c0_2] : memref<32x128xbf16, #tpu.memory_space<vmem>>, vector<32x128xbf16>
    %cst = arith.constant dense<0.000000e+00> : vector<8x128xf32>
    %2 = tpu.matmul %0, %1, %cst {dimension_numbers = #tpu.dot_dimension_numbers<[1], [0], [0], [1], [0, 0, 1, 1], [], []>} : vector<8x32xbf16>, vector<32x128xbf16>, vector<8x128xf32> -> vector<8x128xf32>
    %c0_3 = arith.constant 0 : index
    %c0_4 = arith.constant 0 : index
    %3 = vector.load %arg3[%c0_3, %c0_4] : memref<1x128xf32, #tpu.memory_space<vmem>>, vector<1x128xf32>
    %4 = vector.broadcast %3 : vector<1x128xf32> to vector<8x128xf32>
    %5 = arith.addf %2, %4 : vector<8x128xf32>
    %cst_5 = arith.constant 0.000000e+00 : f32
    %6 = vector.broadcast %cst_5 : f32 to vector<8x128xf32>
    %7 = arith.maximumf %5, %6 : vector<8x128xf32>
    %8 = arith.truncf %7 : vector<8x128xf32> to vector<8x128xbf16>
    %c0_6 = arith.constant 0 : index
    %c0_7 = arith.constant 0 : index
    %9 = vector.load %arg4[%c0_6, %c0_7] : memref<128x128xbf16, #tpu.memory_space<vmem>>, vector<128x128xbf16>
    %cst_8 = arith.constant dense<0.000000e+00> : vector<8x128xf32>
    %10 = tpu.matmul %8, %9, %cst_8 {dimension_numbers = #tpu.dot_dimension_numbers<[1], [0], [0], [1], [0, 0, 1, 1], [], []>} : vector<8x128xbf16>, vector<128x128xbf16>, vector<8x128xf32> -> vector<8x128xf32>
    %c0_9 = arith.constant 0 : index
    %c0_10 = arith.constant 0 : index
    %11 = vector.load %arg5[%c0_9, %c0_10] : memref<1x128xf32, #tpu.memory_space<vmem>>, vector<1x128xf32>
    %12 = vector.broadcast %11 : vector<1x128xf32> to vector<8x128xf32>
    %13 = arith.addf %10, %12 : vector<8x128xf32>
    %c0_11 = arith.constant 0 : index
    %c0_12 = arith.constant 0 : index
    %14 = vector.load %arg6[%c0_11, %c0_12] : memref<8x128xf32, #tpu.memory_space<vmem>>, vector<8x128xf32>
    tpu.vector_store %arg6[%c0_11, %c0_12], %13 {strides = array<i32>} : memref<8x128xf32, #tpu.memory_space<vmem>>, vector<8x128xf32>,
    return
  }
  func.func @transform_0(%arg0: i32) -> (i32, i32) {
    %c0_i32 = arith.constant 0 : i32
    %c0_i32_0 = arith.constant 0 : i32
    return %arg0, %c0_i32 : i32, i32
  }
  func.func @transform_1(%arg0: i32) -> (i32, i32) {
    %c0_i32 = arith.constant 0 : i32
    %c0_i32_0 = arith.constant 0 : i32
    %c0_i32_1 = arith.constant 0 : i32
    return %c0_i32, %c0_i32_0 : i32, i32
  }
  func.func @transform_2(%arg0: i32) -> (i32, i32) {
    %c0_i32 = arith.constant 0 : i32
    %c0_i32_0 = arith.constant 0 : i32
    %c0_i32_1 = arith.constant 0 : i32
    return %c0_i32, %c0_i32_0 : i32, i32
  }
  func.func @transform_3(%arg0: i32) -> (i32, i32) {
    %c0_i32 = arith.constant 0 : i32
    %c0_i32_0 = arith.constant 0 : i32
    %c0_i32_1 = arith.constant 0 : i32
    return %c0_i32, %c0_i32_0 : i32, i32
  }
  func.func @transform_4(%arg0: i32) -> (i32, i32) {
    %c0_i32 = arith.constant 0 : i32
    %c0_i32_0 = arith.constant 0 : i32
    %c0_i32_1 = arith.constant 0 : i32
    return %c0_i32, %c0_i32_0 : i32, i32
  }
  func.func @transform_5(%arg0: i32) -> (i32, i32) {
    %c0_i32 = arith.constant 0 : i32
    %c0_i32_0 = arith.constant 0 : i32
    return %arg0, %c0_i32 : i32, i32
  }
}

</mosaic_0001>

<bundles_post_ra>
// kernel: tpu_custom_call.1
= control target key start
LH: loop header
LB: loop body
LE: loop exit
PB: predicated region body
PF: predicated region fallthrough
CT: control target
= control target key end

     0   :  { %10 = vsyncpa [#allocation3], 0  ;;  %s608_s0 = inlined_call_operand.hbm [shape: bf16[8,32], index: 0, kind: input, shape index: {}]   ;;  %s609_s1 = inlined_call_operand.hbm [shape: bf16[32,128], index: 1, kind: input, shape index: {}]   ;;  %s610_s2 = inlined_call_operand.hbm [shape: f32[1,128], index: 2, kind: input, shape index: {}]   ;;  %s611_s3 = inlined_call_operand.hbm [shape: bf16[128,128], index: 3, kind: input, shape index: {}]   ;;  %s612_s4 = inlined_call_operand.hbm [shape: f32[1,128], index: 4, kind: input, shape index: {}]   ;;  %s613_s5 = inlined_call_operand.hbm [shape: f32[8,128], index: 5, kind: output, shape index: {}]  }
   0x1   :  { %11 = vsyncpa [#allocation6], 0 }
   0x2   :  { %12 = vsyncpa [#allocation9], 0 }
   0x3   :  { %13 = vsyncpa [#allocation4], 0  ;;  %s496_s18 = smov [#allocation5]   ;;  %s356_s22 = scalar_lea.hbm %s609_s1, 256 }
   0x4   :  { %s29_s19 = sshll.u32 %s496_s18, 4  ;;  %p357_p0 = scmp.ne.s32.totalorder %s609_s1, %s356_s22  ;;  %s30_s19 = int_to_ptr.vmem [resolvable:$true] %s29_s19 }
   0x5   :  { %p360_p1 = scmp.lt.u32.totalorder %s356_s22, %s609_s1 }
   0x7   :  { %p362_p2 = pnand %p360_p1, %p357_p0 }
   0x9   :  { %365 = shalt.err (!%p362_p2)
}
   0xa   :  { %s366_s27 = scalar_lea.vmem %s30_s19, 256  ;;  %p371_p4 = scmp.lt.s32.totalorder %s30_s19, %s30_s19 }
   0xb   :  { %p367_p3 = scmp.ne.s32.totalorder %s30_s19, %s366_s27  ;;  %p372_p5 = scmp.lt.s32.totalorder %s366_s27, %s366_s27 }
   0xd   :  { %p373_p6 = por %p372_p5, %p371_p4 }
   0xf   :  { %p374_p7 = pnand %p373_p6, %p367_p3 }
  0x11   :  { %377 = shalt.err (!%p374_p7)
}
  0x12   :  { %s497_s28 = smov 64   ;;  %s498_s29 = smov 4  }
  0x13   :  { %35 = dma.hbm_to_vmem [thread:$0]  %s609_s1, 256, %s30_s19, [#allocation6], %s497_s28, %s497_s28, %s498_s29  }
  0x14   :  { %s499_s7 = smov [#allocation8]   ;;  %s500_s9 = smov [#allocation2]  }
  0x15   :  { %s51_s8 = sshll.u32 %s499_s7, 4  ;;  %s20_s10 = sshll.u32 %s500_s9, 4  ;;  %s52_s8 = int_to_ptr.vmem [resolvable:$true] %s51_s8  ;;  %s21_s10 = int_to_ptr.vmem [resolvable:$true] %s20_s10 }
  0x16   :  { %s378_s13 = scalar_lea.hbm %s611_s3, 1024 }
  0x17   :  { %p379_p8 = scmp.ne.s32.totalorder %s611_s3, %s378_s13  ;;  %p382_p9 = scmp.lt.u32.totalorder %s378_s13, %s611_s3 }
  0x19   :  { %p384_p10 = pnand %p382_p9, %p379_p8 }
  0x1b   :  { %387 = shalt.err (!%p384_p10)
}
  0x1c   :  { %s388_s1 = scalar_lea.vmem %s52_s8, 1024  ;;  %p393_p12 = scmp.lt.s32.totalorder %s52_s8, %s52_s8 }
  0x1d   :  { %p389_p11 = scmp.ne.s32.totalorder %s52_s8, %s388_s1  ;;  %p394_p13 = scmp.lt.s32.totalorder %s388_s1, %s388_s1 }
  0x1f   :  { %p395_p0 = por %p394_p13, %p393_p12 }
  0x21   :  { %p396_p1 = pnand %p395_p0, %p389_p11 }
  0x23   :  { %399 = shalt.err (!%p396_p1)
}
  0x24   :  { %57 = dma.hbm_to_vmem [thread:$0]  %s611_s3, 1024, %s52_s8, [#allocation9], %s497_s28, %s497_s28, %s498_s29  }
  0x25   :  { %s400_s22 = scalar_lea.hbm %s608_s0, 64 }
  0x26   :  { %p401_p2 = scmp.ne.s32.totalorder %s608_s0, %s400_s22  ;;  %p404_p3 = scmp.lt.u32.totalorder %s400_s22, %s608_s0 }
  0x28   :  { %p406_p4 = pnand %p404_p3, %p401_p2 }
  0x2a   :  { %409 = shalt.err (!%p406_p4)
}
  0x2b   :  { %s410_s27 = scalar_lea.vmem %s21_s10, 64  ;;  %p415_p6 = scmp.lt.s32.totalorder %s21_s10, %s21_s10 }
  0x2c   :  { %p411_p5 = scmp.ne.s32.totalorder %s21_s10, %s410_s27  ;;  %p416_p7 = scmp.lt.s32.totalorder %s410_s27, %s410_s27 }
  0x2e   :  { %p417_p8 = por %p416_p7, %p415_p6 }
  0x30   :  { %p418_p9 = pnand %p417_p8, %p411_p5 }
  0x32   :  { %421 = shalt.err (!%p418_p9)
}
  0x33   :  { %23 = dma.hbm_to_vmem [thread:$0]  %s608_s0, 64, %s21_s10, [#allocation3]  }
  0x34   :  { %s501_s29 = smov [#allocation7]   ;;  %s502_s6 = smov [#allocation10]  }
  0x35   :  { %s42_s30 = sshll.u32 %s501_s29, 4  ;;  %s64_s7 = sshll.u32 %s502_s6, 4  ;;  %s43_s30 = int_to_ptr.vmem [resolvable:$true] %s42_s30  ;;  %s65_s7 = int_to_ptr.vmem [resolvable:$true] %s64_s7 }
  0x36   :  { %s422_s11 = scalar_lea.hbm %s610_s2, 16 }
  0x37   :  { %p423_p10 = scmp.ne.s32.totalorder %s610_s2, %s422_s11  ;;  %p426_p11 = scmp.lt.u32.totalorder %s422_s11, %s610_s2 }
  0x39   :  { %p428_p12 = pnand %p426_p11, %p423_p10 }
  0x3b   :  { %431 = shalt.err (!%p428_p12)
}
  0x3c   :  { %s432_s0 = scalar_lea.vmem %s43_s30, 16  ;;  %s436_s10 = scalar_lea.vmem %s43_s30, 32 }
  0x3d   :  { %p433_p13 = scmp.ne.s32.totalorder %s43_s30, %s432_s0  ;;  %p437_p0 = scmp.lt.s32.totalorder %s43_s30, %s43_s30 }
  0x3e   :  { %p438_p1 = scmp.lt.s32.totalorder %s436_s10, %s432_s0 }
  0x40   :  { %p439_p2 = por %p438_p1, %p437_p0 }
  0x42   :  { %p440_p3 = pnand %p439_p2, %p433_p13 }
  0x44   :  { %443 = shalt.err (!%p440_p3)
}
  0x45   :  { %45 = dma.hbm_to_vmem [thread:$0]  %s610_s2, 16, %s43_s30, [#allocation6]  }
  0x46   :  { %s444_s19 = scalar_lea.hbm %s612_s4, 16 }
  0x47   :  { %p445_p4 = scmp.ne.s32.totalorder %s612_s4, %s444_s19  ;;  %p448_p5 = scmp.lt.u32.totalorder %s444_s19, %s612_s4 }
  0x49   :  { %p450_p6 = pnand %p448_p5, %p445_p4 }
  0x4b   :  { %453 = shalt.err (!%p450_p6)
}
  0x4c   :  { %s454_s24 = scalar_lea.vmem %s65_s7, 16  ;;  %s458_s25 = scalar_lea.vmem %s65_s7, 32 }
  0x4d   :  { %p455_p7 = scmp.ne.s32.totalorder %s65_s7, %s454_s24  ;;  %p459_p8 = scmp.lt.s32.totalorder %s65_s7, %s65_s7 }
  0x4e   :  { %p460_p9 = scmp.lt.s32.totalorder %s458_s25, %s454_s24 }
  0x50   :  { %p461_p10 = por %p460_p9, %p459_p8 }
  0x52   :  { %p462_p11 = pnand %p461_p10, %p455_p7 }
  0x54   :  { %465 = shalt.err (!%p462_p11)
}
  0x55   :  { %67 = dma.hbm_to_vmem [thread:$0]  %s612_s4, 16, %s65_s7, [#allocation9]  }
  0x56   :  { %488 = dma.done.wait [#allocation3], 64  }
  0x57   :  { %489 = vsyncadd [#allocation3], 4294967232 }
  0x58   :  { %490 = dma.done.wait [#allocation6], 272  }
  0x59   :  { %491 = vsyncadd [#allocation6], 4294967024 }
  0x5a   :  { %492 = dma.done.wait [#allocation9], 1040  }
  0x5b   :  { %493 = vsyncadd [#allocation9], 4294966256  ;;  %v503_v0 = vmov 0.0   ;;  %vm504_vm0 = vmmov 0   ;;  %v346_v1 = vld [vmem:[#allocation5] sm:$0xff]   ;;  %v347_v2 = vld [vmem:[#allocation5 + $0x8] sm:$0xff]  }
  0x5c   :  { %308 = vmatprep.subr.bf16.mxu0 %v503_v0  ;;  %312 = vmatprep.mubr.msk.bf16.mxu0 %vm504_vm0, %v503_v0  ;;  %v348_v3 = vld [vmem:[#allocation8] sm:$0xff]   ;;  %vm108_vm1 = vcmask 261120   ;;  %v349_v4 = vld [vmem:[#allocation8 + $0x8] sm:$0xff]   ;;  %v350_v6 = vld [vmem:[#allocation8 + $0x10] sm:$0xff]   ;;  %s505_s4 = smov [#allocation11]  }
  0x5d   :  { %316 = vmatprep.subr.bf16.mxu1 %v503_v0  ;;  %332 = vmatprep.mubr.msk.bf16.mxu1 %vm504_vm0, %v503_v0  ;;  %v84_v5 = vld [vmem:[#allocation2] sm:$0xf]  ;;  %v351_v7 = vld [vmem:[#allocation8 + $0x18] sm:$0xff]   ;;  %v352_v8 = vld [vmem:[#allocation8 + $0x20] sm:$0xff]   ;;  %s272_s27 = sshll.u32 %s505_s4, 4  ;;  %s273_s27 = int_to_ptr.vmem [resolvable:$true] %s272_s27 }
  0x5e   :  { %309 = vmatpush3.bf16.msra.mxu0 %v346_v1  ;;  %317 = vmatpush3.bf16.msra.mxu1 %v348_v3  ;;  %v353_v9 = vld [vmem:[#allocation8 + $0x28] sm:$0xff]   ;;  %v354_v10 = vld [vmem:[#allocation8 + $0x30] sm:$0xff]   ;;  %v355_v11 = vld [vmem:[#allocation8 + $0x38] sm:$0xff]   ;;  %s466_s3 = scalar_lea.vmem %s273_s27, 128  ;;  %p471_p13 = scmp.lt.s32.totalorder %s273_s27, %s273_s27 }
  0x5f   :  { %310 = vmatprep.subr.bf16.mxu0 %v503_v0  ;;  %318 = vmatprep.subr.bf16.mxu1 %v503_v0  ;;  %v283_v12 = vld [vmem:[#allocation7] ss:$0 sm:$0xff]  ;;  %v287_v20 = vld [vmem:[#allocation10] ss:$0 sm:$0xff]  ;;  %p467_p12 = scmp.ne.s32.totalorder %s273_s27, %s466_s3  ;;  %p472_p0 = scmp.lt.s32.totalorder %s466_s3, %s466_s3 }
  0x61   :  { %p473_p1 = por %p472_p0, %p471_p13 }
  0x62   :  { %311 = vmatpush3.bf16.msra.mxu0 %v347_v2  ;;  %319 = vmatpush3.bf16.msra.mxu1 %v349_v4 }
  0x63   :  { %320 = vmatprep.subr.bf16.mxu1 %v503_v0  ;;  %p474_p2 = pnand %p473_p1, %p467_p12 }
  0x65   :  { %313 = vmatmul.mubr.msk.bf16.vlgmr.msra.gmra.mrb[0].mxu0 %vm108_vm1, %v84_v5 }
  0x66   :  { %321 = vmatpush3.bf16.msra.mxu1 %v350_v6 }
  0x67   :  { %322 = vmatprep.subr.bf16.mxu1 %v503_v0 }
  0x6a   :  { %323 = vmatpush3.bf16.msra.mxu1 %v351_v7 }
  0x6b   :  { %324 = vmatprep.subr.bf16.mxu1 %v503_v0 }
  0x6e   :  { %325 = vmatpush3.bf16.msra.mxu1 %v352_v8 }
  0x6f   :  { %326 = vmatprep.subr.bf16.mxu1 %v503_v0 }
  0x72   :  { %327 = vmatpush3.bf16.msra.mxu1 %v353_v9 }
  0x73   :  { %328 = vmatprep.subr.bf16.mxu1 %v503_v0 }
  0x76   :  { %329 = vmatpush3.bf16.msra.mxu1 %v354_v10 }
  0x77   :  { %330 = vmatprep.subr.bf16.mxu1 %v503_v0 }
  0x7a   :  { %331 = vmatpush3.bf16.msra.mxu1 %v355_v11 }
 0x138   :  { %v146_v13 = vpop.f32.mrb[0].mxu0 }
 0x139   :  { %v147_v14 = vadd.f32 %v283_v12, %v146_v13  ;;  %v314_v15 = vpop.f32.mrb[1].mxu0 }
 0x13a   :  { %v149_v16 = vpop.f32.mrb[2].mxu0 }
 0x13b   :  { %v152_v17 = vmax.f32 %v147_v14, 0.0  ;;  %v315_v18 = vpop.f32.mrb[3].mxu0 }
 0x13d   :  { %v153_v19 = vpack.c.bf16 %v152_v17, %v152_v17 }
 0x13f   :  { %333 = vmatmul.mubr.bf16.vlgmr.msra.gmra.mrb[0].mxu1 %v153_v19 }
 0x212   :  { %v259_v21 = vpop.f32.mrb[0].mxu1 }
 0x213   :  { %v260_v22 = vadd.f32 %v287_v20, %v259_v21  ;;  %v334_v23 = vpop.f32.mrb[1].mxu1 }
 0x214   :  { %v262_v24 = vpop.f32.mrb[2].mxu1 }
 0x215   :  { %265 = vst [vmem:[#allocation11] sm:$0xff] %v260_v22  ;;  %v335_v25 = vpop.f32.mrb[3].mxu1 }
 0x216   :  { %477 = shalt.err (!%p474_p2)
}
 0x217   :  { %s478_s30 = scalar_lea.hbm %s613_s5, 128 }
 0x218   :  { %p479_p3 = scmp.ne.s32.totalorder %s613_s5, %s478_s30  ;;  %p482_p4 = scmp.lt.u32.totalorder %s478_s30, %s613_s5 }
 0x21a   :  { %p484_p5 = pnand %p482_p4, %p479_p3 }
 0x21c   :  { %487 = shalt.err (!%p484_p5)
}
 0x21d   :  { %275 = dma.vmem_to_hbm [thread:$0]  %s273_s27, 128, %s613_s5, [#allocation4]  }
 0x21e   :  { %494 = dma.done.wait [#allocation4], 128  }
 0x21f   :  { %495 = vsyncadd [#allocation4], 4294967168 }
 0x220   :  { %279 = vsyncpa [#allocation3], 1 }
 0x221   :  { %280 = vsyncpa [#allocation6], 1 }
 0x222   :  { %281 = vsyncpa [#allocation9], 1 }
 0x223   :  { %282 = vsyncpa [#allocation4], 1 }

</bundles_post_ra>
